<compile_context>
chip_gen: v6e
topology: v6e:2x2x1
jax: 0.10.0
libtpu: 0.0.40
codegen_flags: <defaults>
</compile_context>

<pallas_src>
import functools

import jax
import jax.numpy as jnp
from jax.experimental import pallas as pl
from jax.experimental.pallas import tpu as pltpu


_LANE = 128
_TP_CAP = 2048                     # lane-tile cap; working set stays far under VMEM budget
_VMEM_BUDGET = 8 * 1024 * 1024     # bytes; << 32 MiB scoped default on v5e/v6e/v7x


def _round_up(a, m):
    return ((a + m - 1) // m) * m


def _sender_kernel(w_ref, x_ref, b_ref, o_ref, *, nb, cast_bf16):
    # w_ref: (N2p, Cin)   x_ref: (Nb, Cin, tp)   b_ref: (N2p, 1)   o_ref: (Nb, N2p, tp)
    w = w_ref[...]
    b = b_ref[...]
    if cast_bf16:
        w = w.astype(jnp.bfloat16)
    for i in range(nb):  # static, tiny trip-count (Nb images per grid step)
        xi = x_ref[i]
        if cast_bf16:
            xi = xi.astype(jnp.bfloat16)
        acc = jnp.dot(w, xi, preferred_element_type=jnp.float32)
        o_ref[i] = (acc + b).astype(o_ref.dtype)


def _pick_pixel_tile(P, N):
    """Lane-dense pixel tile (multiple of 128) minimizing padding, >=2 parallel steps."""
    if P <= _TP_CAP:
        tp = _round_up(P, _LANE)
    else:
        best_pad, tp = None, _LANE
        for cand in range(_TP_CAP, _LANE - 1, -_LANE):
            pad = _round_up(P, cand) - P
            if best_pad is None or pad < best_pad:
                best_pad, tp = pad, cand
    n_ptiles = _round_up(P, tp) // tp
    # v7x has 2 TensorCores sharded over "parallel" axes: make sure there are >= 2 steps.
    if N * n_ptiles < 2 and P > _LANE:
        tp = _round_up(-(-P // 2), _LANE)
        n_ptiles = _round_up(P, tp) // tp
    return tp, n_ptiles


@functools.partial(jax.jit, static_argnames=("kernel_size", "patch_layout"))
def sender_forward(x, weight, bias, *, kernel_size, patch_layout=False):
    """ConvTranspose2d(in, out, k, stride=k, padding=0) forward.

    x:      (N, C_in, H, W)        NCHW, like PyTorch
    weight: (C_in, C_out, k, k)    PyTorch ConvTranspose2d weight layout
    bias:   (C_out,)
    returns (N, C_out, H*k, W*k)   (or (N, C_out, k, k, H, W) if patch_layout=True)
    """
    N, Cin, H, W = x.shape
    Cin_w, Cout, kh, kw = weight.shape
    assert Cin_w == Cin and kh == kernel_size and kw == kernel_size
    k = kernel_size

    P = H * W              # pixels per image -> lane axis of loads & stores
    N2 = Cout * k * k      # per-pixel output patch -> sublane axis
    N2p = _round_up(N2, 8)

    itemsize = jnp.dtype(x.dtype).itemsize
    tp, n_ptiles = _pick_pixel_tile(P, N)
    P_pad = n_ptiles * tp

    # Optionally process several images per grid step (amortize ~0.35 us/step on v5e/v6e),
    # but only while we keep >= 2 parallel steps (v7x) and stay inside the VMEM budget.
    nb = 1
    if N > 1 and N * n_ptiles > 2:
        per_image = 2 * (N2p * tp + Cin * tp) * max(itemsize, 4)  # double-buffered in+out
        for cand in range(N, 1, -1):
            if N % cand == 0 and (N // cand) * n_ptiles >= 2 and cand * per_image <= _VMEM_BUDGET:
                nb = cand
                break

    # (N, Cin, H, W) -> (N, Cin, H*W): pure reshape, no HBM copy.
    xm = x.reshape(N, Cin, P)
    if P_pad != P:
        # TODO(synk): replace with an in-kernel masked tail store; no-op for aligned P.
        xm = jnp.pad(xm, ((0, 0), (0, 0), (0, P_pad - P)))

    # Weight: (Cin, Cout, k, k) -> (Cin, N2) -> (N2, Cin); bias expanded per patch slot.
    wt = jnp.transpose(weight.reshape(Cin, N2), (1, 0))
    bm = jnp.broadcast_to(bias.reshape(Cout, 1, 1), (Cout, k, k)).reshape(N2, 1)
    if N2p != N2:
        wt = jnp.pad(wt, ((0, N2p - N2), (0, 0)))
        bm = jnp.pad(bm, ((0, N2p - N2), (0, 0)))

    # bf16 MXU path once the contraction is deep enough to matter (v6e/v7x); accumulation
    # remains f32 via preferred_element_type so numerics stay within matmul rounding.
    cast_bf16 = bool(x.dtype == jnp.float32 and Cin >= 64)

    grid = (N // nb, n_ptiles)

    out_bytes = N * N2p * P_pad * itemsize
    cost = pl.CostEstimate(
        flops=2 * N * N2 * Cin * P,
        transcendentals=0,
        bytes_accessed=int(xm.size * itemsize + wt.size * wt.dtype.itemsize
                           + bm.size * bm.dtype.itemsize + out_bytes),
    )

    kernel = functools.partial(_sender_kernel, nb=nb, cast_bf16=cast_bf16)

    out = pl.pallas_call(
        kernel,
        out_shape=jax.ShapeDtypeStruct((N, N2p, P_pad), x.dtype),
        grid=grid,
        in_specs=[
            pl.BlockSpec((N2p, Cin), lambda b, p: (0, 0)),         # resident weight
            pl.BlockSpec((nb, Cin, tp), lambda b, p: (b, 0, p)),   # x pixels (lane-dense)
            pl.BlockSpec((N2p, 1), lambda b, p: (0, 0)),           # resident bias
        ],
        out_specs=pl.BlockSpec((nb, N2p, tp), lambda b, p: (b, 0, p)),
        compiler_params=pltpu.CompilerParams(
            dimension_semantics=("parallel", "parallel")
        ),
        cost_estimate=cost,
    )(wt, xm, bm)

    # Drop padding only if any was added (no-op slice otherwise).
    if N2p != N2 or P_pad != P:
        out = out[:, :N2, :P]
    out = out.reshape(N, Cout, k, k, H, W)
    if patch_layout:
        return out  # zero-copy layout for consumers that fuse the depth-to-space
    # Depth-to-space to NCHW: single fused XLA transpose-copy (see TODO at top of file).
    out = jnp.transpose(out, (0, 1, 4, 2, 5, 3)).reshape(N, Cout, H * k, W * k)
    return out


def _reference_forward(x, weight, bias, kernel_size):
    # Pure-JAX reference for the non-overlapping transposed conv.
    N, Cin, H, W = x.shape
    _, Cout, k, _ = weight.shape
    out = jnp.einsum("nchw,coij->nohiwj", x, weight)
    out = out.reshape(N, Cout, H * k, W * k) + bias.reshape(1, Cout, 1, 1)
    return out


if __name__ == "__main__":
    # Small shapes consistent with the module: ConvTranspose2d(in=4, out=8, k=3, stride=3)
    N, Cin, Cout, H, W, k = 2, 4, 8, 16, 16, 3

    key = jax.random.PRNGKey(0)
    kx, kw, kb = jax.random.split(key, 3)
    x = jax.random.normal(kx, (N, Cin, H, W), dtype=jnp.float32)
    weight = jax.random.normal(kw, (Cin, Cout, k, k), dtype=jnp.float32) * 0.1
    bias = jax.random.normal(kb, (Cout,), dtype=jnp.float32) * 0.1

    out = sender_forward(x, weight, bias, kernel_size=k)
    out = jax.block_until_ready(out)

    ref = _reference_forward(x, weight, bias, k)
    assert out.shape == (N, Cout, H * k, W * k), out.shape
    assert jnp.allclose(out, ref, atol=1e-4, rtol=1e-4), "mismatch vs reference"

    print("KERNEL_OK")
</pallas_src>

<mosaic_0001>
module attributes {stable_mosaic.version = 11 : i64} {
  func.func @_sender_kernel(%arg0: i32, %arg1: i32, %arg2: memref<72x4xf32, #tpu.memory_space<vmem>>, %arg3: memref<1x4x256xf32, #tpu.memory_space<vmem>>, %arg4: memref<72x1xf32, #tpu.memory_space<vmem>>, %arg5: memref<1x72x256xf32, #tpu.memory_space<vmem>>) attributes {dimension_semantics = [#tpu.dimension_semantics<parallel>, #tpu.dimension_semantics<parallel>], iteration_bounds = array<i64: 2, 1>, scalar_prefetch = 0 : i64, scratch_operands = 0 : i64, tpu.core_type = #tpu.core_type<tc>, window_params = [{pipeline_mode = #tpu.pipeline_mode<synchronous>, transform_indices = @transform_0, window_bounds = array<i64: 72, 4>}, {transform_indices = @transform_1, window_bounds = array<i64: 1, 4, 256>}, {pipeline_mode = #tpu.pipeline_mode<synchronous>, transform_indices = @transform_2, window_bounds = array<i64: 72, 1>}, {transform_indices = @transform_3, window_bounds = array<i64: 1, 72, 256>}]} {
    %c0 = arith.constant 0 : index
    %c0_0 = arith.constant 0 : index
    %0 = vector.load %arg2[%c0, %c0_0] : memref<72x4xf32, #tpu.memory_space<vmem>>, vector<72x4xf32>
    %c0_1 = arith.constant 0 : index
    %c0_2 = arith.constant 0 : index
    %1 = vector.load %arg4[%c0_1, %c0_2] : memref<72x1xf32, #tpu.memory_space<vmem>>, vector<72x1xf32>
    %c0_3 = arith.constant 0 : index
    %c0_4 = arith.constant 0 : index
    %c0_5 = arith.constant 0 : index
    %2 = vector.load %arg3[%c0_3, %c0_4, %c0_5] : memref<1x4x256xf32, #tpu.memory_space<vmem>>, vector<1x4x256xf32>
    %3 = vector.shape_cast %2 : vector<1x4x256xf32> to vector<4x256xf32>
    %cst = arith.constant dense<0.000000e+00> : vector<72x256xf32>
    %4 = tpu.matmul %0, %3, %cst {dimension_numbers = #tpu.dot_dimension_numbers<[1], [0], [0], [1], [0, 0, 1, 1], [], []>} : vector<72x4xf32>, vector<4x256xf32>, vector<72x256xf32> -> vector<72x256xf32>
    %5 = vector.broadcast %1 : vector<72x1xf32> to vector<72x256xf32>
    %6 = arith.addf %4, %5 : vector<72x256xf32>
    %c0_6 = arith.constant 0 : index
    %c0_7 = arith.constant 0 : index
    %c0_8 = arith.constant 0 : index
    %7 = vector.load %arg5[%c0_6, %c0_7, %c0_8] : memref<1x72x256xf32, #tpu.memory_space<vmem>>, vector<1x72x256xf32>
    %8 = vector.shape_cast %7 : vector<1x72x256xf32> to vector<72x256xf32>
    %9 = vector.shape_cast %6 : vector<72x256xf32> to vector<1x72x256xf32>
    tpu.vector_store %arg5[%c0_6, %c0_7, %c0_8], %9 {strides = array<i32>} : memref<1x72x256xf32, #tpu.memory_space<vmem>>, vector<1x72x256xf32>,
    return
  }
  func.func @transform_0(%arg0: i32, %arg1: i32) -> (i32, i32) {
    %c0_i32 = arith.constant 0 : i32
    %c0_i32_0 = arith.constant 0 : i32
    %c0_i32_1 = arith.constant 0 : i32
    return %c0_i32, %c0_i32_0 : i32, i32
  }
  func.func @transform_1(%arg0: i32, %arg1: i32) -> (i32, i32, i32) {
    %c0_i32 = arith.constant 0 : i32
    %c0_i32_0 = arith.constant 0 : i32
    return %arg0, %c0_i32, %arg1 : i32, i32, i32
  }
  func.func @transform_2(%arg0: i32, %arg1: i32) -> (i32, i32) {
    %c0_i32 = arith.constant 0 : i32
    %c0_i32_0 = arith.constant 0 : i32
    %c0_i32_1 = arith.constant 0 : i32
    return %c0_i32, %c0_i32_0 : i32, i32
  }
  func.func @transform_3(%arg0: i32, %arg1: i32) -> (i32, i32, i32) {
    %c0_i32 = arith.constant 0 : i32
    %c0_i32_0 = arith.constant 0 : i32
    return %arg0, %c0_i32, %arg1 : i32, i32, i32
  }
}

</mosaic_0001>

<bundles_post_ra>
// kernel: sender_forward.1
= control target key start
LH: loop header
LB: loop body
LE: loop exit
PB: predicated region body
PF: predicated region fallthrough
CT: control target
= control target key end

     0   :  { %s633_s12 = smov 0   ;;  %s635_s13 = smov 0   ;;  %s753_s0 = inlined_call_operand.vmem [shape: f32[72,4], index: 0, kind: input, shape index: {}]   ;;  %s754_s1 = inlined_call_operand.vmem [shape: f32[2,4,256], index: 1, kind: input, shape index: {}]   ;;  %s755_s2 = inlined_call_operand.vmem [shape: f32[72,1], index: 2, kind: input, shape index: {}]   ;;  %s756_s3 = inlined_call_operand.vmem [shape: f32[2,72,256], index: 3, kind: output, shape index: {}]  }
   0x1   :  { %s637_s14 = smov 0  }
   0x2 LB: > { %s25_s15 = sadd.s32 1, %s605_s13  ;;  %p537_p0 = scmp.ge.s32.totalorder %s609_s14, 1  ;;  %s609_s14 = sphi %s637_s14, %s13_s14   ;;  %s605_s13 = sphi %s635_s13, %s758_s13   ;;  %s601_s12 = sphi %s633_s12, %s757_s12  }
   0x3   : > { %p27_p1 = scmp.ge.s32.totalorder %s25_s15, 2  ;;  %p158_p2 = scmp.lt.s32.totalorder %s609_s14, 3 }
   0x5   : > { %s760_s15 = smov (%p27_p1, %s25_s15), 0  ;;  %p159_p3 = pnand %p537_p0, %p158_p2 }
   0x6   : > { %p191_p4 = scmp.lt.s32.totalorder (!%p159_p3), %s601_s12, 1 }
   0x7   : > { %162 = sbr.rel (%p159_p3) target bundleno = 234 (0xea), region = 32 }
   0xc   : > { %v611_v0 = vmov 0.0   ;;  %s762_s12 = smov (!%p191_p4, %s601_s12), 1  ;;  %v612_v1 = vmov 0   ;;  %v219_v2 = vld [vmem:[%s755_s2] sm:$0xff]  ;;  %v221_v3 = vld [vmem:[%s755_s2 + $0x10] sm:$0xff]  ;;  %v220_v4 = vld [vmem:[%s755_s2 + $0x8] sm:$0xff] }
   0xd   : > { %373 = vmatprep.mubr.f32.mxu0 %v611_v0  ;;  %403 = vmatprep.mubr.f32.mxu1 %v611_v0  ;;  %s554_s18 = sshll.u32 %s762_s12, 3  ;;  %vm304_vm0 = vcmask 1043456   ;;  %v210_v7 = vld [vmem:[%s753_s0] sm:$0xff]  ;;  %vm276_vm1 = vcmask 31744   ;;  %v215_v8 = vld [vmem:[%s753_s0 + $0x28] sm:$0xff]  ;;  %v222_v10 = vld [vmem:[%s755_s2 + $0x18] sm:$0xff] }
   0xe   : > { %584 = vset.pattern.permute.xlu0 %v612_v1  ;;  %585 = vset.pattern.permute.xlu1 %v612_v1  ;;  %s198_s23 = scalar_lea.vmem %s754_s1, %s554_s18  ;;  %v223_v9 = vld [vmem:[%s755_s2 + $0x20] sm:$0xff]  ;;  %v211_v11 = vld [vmem:[%s753_s0 + $0x8] sm:$0xff]  ;;  %v216_v12 = vld [vmem:[%s753_s0 + $0x30] sm:$0xff]  ;;  %s557_s6 = smul.u32 144, %s762_s12 }
   0xf   : > { %231 = vperm.xlu0 %584, %v219_v2   ;;  %241 = vperm.xlu1 %585, %v221_v3   ;;  %v228_v5 = vld [vmem:[%s198_s23] sm:$0xff]  ;;  %v225_v13 = vld [vmem:[%s755_s2 + $0x30] sm:$0xff]  ;;  %v224_v14 = vld [vmem:[%s755_s2 + $0x28] sm:$0xff] }
  0x10   : > { %v275_v6 = vcombine.high %v228_v5, %v228_v5  ;;  %v212_v15 = vld [vmem:[%s753_s0 + $0x10] sm:$0xff]  ;;  %v217_v16 = vld [vmem:[%s753_s0 + $0x38] sm:$0xff]  ;;  %v227_v17 = vld [vmem:[%s755_s2 + $0x40] sm:$0xff]  ;;  %s724_s9 = scalar_lea.vmem %s756_s3, %s557_s6 }
  0x11   : > { %v226_v18 = vld [vmem:[%s755_s2 + $0x38] sm:$0xff]  ;;  %v218_v20 = vld [vmem:[%s753_s0 + $0x40] sm:$0xff] }
  0x12   : > { %541 = vmatprep.subr.msk.mxu0 %vm304_vm0, %v275_v6  ;;  %555 = vmatprep.subr.msk.mxu1 %vm304_vm0, %v275_v6  ;;  %v213_v19 = vld [vmem:[%s753_s0 + $0x18] sm:$0xff]  ;;  %v214_v21 = vld [vmem:[%s753_s0 + $0x20] sm:$0xff] }
  0x13   : > { %236 = vperm.xlu0 %584, %v220_v4   ;;  %542 = vmatpush1.msk.msra.mxu0 %vm304_vm0, %v228_v5 }
  0x14   : > { %556 = vmatpush1.msk.msra.mxu1 %vm304_vm0, %v228_v5  ;;  %543 = vmatmul.mubr.msk.f32.vlgmr.msra.gmra.mxu0 %vm276_vm1, %v210_v7 }
  0x15   : > { %548 = vmatmul.mubr.msk.f32.vlgmr.msra.gmra.mxu1 %vm276_vm1, %v215_v8  ;;  %379 = vmatprep.mubr.f32.mxu0 %v611_v0 }
  0x16   : > { %409 = vmatprep.mubr.f32.mxu1 %v611_v0  ;;  %246 = vperm.xlu1 %585, %v222_v10  }
  0x17   : > { %251 = vperm.xlu0 %584, %v223_v9  }
  0x18   : > { %544 = vmatmul.mubr.msk.f32.gmra.mxu0 %vm276_vm1, %v211_v11 }
  0x19   : > { %549 = vmatmul.mubr.msk.f32.gmra.mxu1 %vm276_vm1, %v216_v12  ;;  %385 = vmatprep.mubr.f32.mxu0 %v611_v0 }
  0x1a   : > { %415 = vmatprep.mubr.f32.mxu1 %v611_v0  ;;  %256 = vperm.xlu1 %585, %v224_v14  }
  0x1b   : > { %261 = vperm.xlu0 %584, %v225_v13  }
  0x1c   : > { %545 = vmatmul.mubr.msk.f32.gmra.mxu0 %vm276_vm1, %v212_v15 }
  0x1d   : > { %550 = vmatmul.mubr.msk.f32.gmra.mxu1 %vm276_vm1, %v217_v16  ;;  %391 = vmatprep.mubr.f32.mxu0 %v611_v0 }
  0x1e   : > { %421 = vmatprep.mubr.f32.mxu1 %v611_v0  ;;  %266 = vperm.xlu1 %585, %v226_v18  }
  0x1f   : > { %271 = vperm.xlu0 %584, %v227_v17  }
  0x20   : > { %546 = vmatmul.mubr.msk.f32.gmra.mxu0 %vm276_vm1, %v213_v19 }
  0x21   : > { %551 = vmatmul.mubr.msk.f32.gmra.mxu1 %vm276_vm1, %v218_v20  ;;  %397 = vmatprep.mubr.f32.mxu0 %v611_v0 }
  0x24   : > { %547 = vmatmul.mubr.msk.f32.gmra.mxu0 %vm276_vm1, %v214_v21 }
  0x8a   : > { %v232_v22 = vpop.permute.xlu0 %231  ;;  %v242_v23 = vpop.permute.xlu1 %241 }
  0x8e   : > { %v237_v24 = vpop.permute.xlu0 %236 }
  0x91   : > { %v247_v25 = vpop.permute.xlu1 %246 }
  0x92   : > { %v252_v26 = vpop.permute.xlu0 %251 }
  0x95   : > { %v257_v27 = vpop.permute.xlu1 %256 }
  0x96   : > { %v262_v34 = vpop.permute.xlu0 %261 }
  0x99   : > { %v267_v43 = vpop.permute.xlu1 %266 }
  0x9a   : > { %v272_v52 = vpop.permute.xlu0 %271 }
  0xd4   : > { %v375_v28 = vpop.f32.mrf.mxu0 }
  0xd5   : > { %v405_v29 = vpop.f32.mrf.mxu1  ;;  %v376_v30 = vadd.f32 %v375_v28, %v232_v22 }
  0xd6   : > { %v406_v31 = vadd.f32 %v405_v29, %v257_v27  ;;  %v377_v32 = vpop.f32.mrf.mxu0 }
  0xd7   : > { %v407_v33 = vpop.f32.mrf.mxu1  ;;  %428 = vst [vmem:[%s724_s9] sm:$0xff] %v376_v30  ;;  %v378_v35 = vadd.f32 %v377_v32, %v232_v22 }
  0xd8   : > { %438 = vst [vmem:[%s724_s9 + $0x50] sm:$0xff] %v406_v31  ;;  %v408_v36 = vadd.f32 %v407_v33, %v257_v27  ;;  %v381_v37 = vpop.f32.mrf.mxu0 }
  0xd9   : > { %v411_v38 = vpop.f32.mrf.mxu1  ;;  %429 = vst [vmem:[%s724_s9 + $0x8] sm:$0xff] %v378_v35  ;;  %v382_v39 = vadd.f32 %v381_v37, %v237_v24 }
  0xda   : > { %439 = vst [vmem:[%s724_s9 + $0x58] sm:$0xff] %v408_v36  ;;  %v412_v40 = vadd.f32 %v411_v38, %v262_v34  ;;  %v383_v41 = vpop.f32.mrf.mxu0 }
  0xdb   : > { %v413_v42 = vpop.f32.mrf.mxu1  ;;  %430 = vst [vmem:[%s724_s9 + $0x10] sm:$0xff] %v382_v39  ;;  %v384_v44 = vadd.f32 %v383_v41, %v237_v24 }
  0xdc   : > { %440 = vst [vmem:[%s724_s9 + $0x60] sm:$0xff] %v412_v40  ;;  %v414_v45 = vadd.f32 %v413_v42, %v262_v34  ;;  %v387_v46 = vpop.f32.mrf.mxu0 }
  0xdd   : > { %v417_v47 = vpop.f32.mrf.mxu1  ;;  %431 = vst [vmem:[%s724_s9 + $0x18] sm:$0xff] %v384_v44  ;;  %v388_v48 = vadd.f32 %v387_v46, %v242_v23 }
  0xde   : > { %441 = vst [vmem:[%s724_s9 + $0x68] sm:$0xff] %v414_v45  ;;  %v418_v49 = vadd.f32 %v417_v47, %v267_v43  ;;  %v389_v50 = vpop.f32.mrf.mxu0 }
  0xdf   : > { %v419_v51 = vpop.f32.mrf.mxu1  ;;  %432 = vst [vmem:[%s724_s9 + $0x20] sm:$0xff] %v388_v48  ;;  %v390_v53 = vadd.f32 %v389_v50, %v242_v23 }
  0xe0   : > { %442 = vst [vmem:[%s724_s9 + $0x70] sm:$0xff] %v418_v49  ;;  %v420_v54 = vadd.f32 %v419_v51, %v267_v43  ;;  %v393_v55 = vpop.f32.mrf.mxu0 }
  0xe1   : > { %v423_v56 = vpop.f32.mrf.mxu1  ;;  %433 = vst [vmem:[%s724_s9 + $0x28] sm:$0xff] %v390_v53  ;;  %v394_v57 = vadd.f32 %v393_v55, %v247_v25 }
  0xe2   : > { %443 = vst [vmem:[%s724_s9 + $0x78] sm:$0xff] %v420_v54  ;;  %v424_v58 = vadd.f32 %v423_v56, %v272_v52  ;;  %v395_v59 = vpop.f32.mrf.mxu0 }
  0xe3   : > { %v425_v60 = vpop.f32.mrf.mxu1  ;;  %434 = vst [vmem:[%s724_s9 + $0x30] sm:$0xff] %v394_v57  ;;  %v396_v61 = vadd.f32 %v395_v59, %v247_v25 }
  0xe4   : > { %444 = vst [vmem:[%s724_s9 + $0x80] sm:$0xff] %v424_v58  ;;  %v426_v62 = vadd.f32 %v425_v60, %v272_v52  ;;  %v399_v63 = vpop.f32.mrf.mxu0 }
  0xe5   : > { %435 = vst [vmem:[%s724_s9 + $0x38] sm:$0xff] %v396_v61  ;;  %v400_v0 = vadd.f32 %v399_v63, %v252_v26 }
  0xe6   : > { %445 = vst [vmem:[%s724_s9 + $0x88] sm:$0xff] %v426_v62  ;;  %v401_v1 = vpop.f32.mrf.mxu0 }
  0xe7   : > { %436 = vst [vmem:[%s724_s9 + $0x40] sm:$0xff] %v400_v0  ;;  %v402_v2 = vadd.f32 %v401_v1, %v252_v26 }
  0xe9   : > { %437 = vst [vmem:[%s724_s9 + $0x48] sm:$0xff] %v402_v2 }
  0xea PF: > { %s13_s14 = sadd.s32 1, %s609_s14   ;;  %s757_s12 = smov %s605_s13 }
  0xeb   : > { %p10_p5 = scmp.ge.s32.totalorder %s13_s14, 4   ;;  %s758_s13 = smov %s760_s15 }
  0xed   :  { %12 = sbr.rel (!%p10_p5) target bundleno = 2 (0x2), region = 62 }

</bundles_post_ra>
